<compile_context>
chip_gen: v7x
topology: tpu7x:2x2x1
jax: 0.10.0
libtpu: 0.0.40
codegen_flags: <defaults>
</compile_context>

<pallas_src>
import jax
import jax.numpy as jnp
from jax.experimental import pallas as pl
from jax.experimental.pallas import tpu as pltpu

LANE = 128
BLOCK_ROWS = 1024   # 1024 rows x 128 lanes = 131072 quaternions per grid step.


def _quaternion_kernel(x_ref, o_ref):
    # x_ref: (4, R, 128) f32   o_ref: (9, R, 128) f32
    x0 = x_ref[0]
    x1 = x_ref[1]
    x2 = x_ref[2]
    x3 = x_ref[3]

    x00 = x0 * x0
    x11 = x1 * x1
    x22 = x2 * x2
    x33 = x3 * x3

    # r_i * r_j == x_i * x_j / (1e-5 + sum_k x_k^2); fold the common factor 2
    # into the reciprocal.  approx=False keeps full f32 accuracy (the approx EUP
    # path would violate the 1e-5 abs-error contract) while still taking the
    # divide off the VALU's critical path.
    denom = 1e-5 + ((x00 + x11) + (x22 + x33))
    s = 2.0 * pl.reciprocal(denom, approx=False)

    x01 = x0 * x1
    x23 = x2 * x3
    x02 = x0 * x2
    x13 = x1 * x3
    x12 = x1 * x2
    x03 = x0 * x3

    # Nine direct row stores (static first-axis indices are zero-cost views).
    o_ref[0] = 1.0 - s * (x11 + x22)
    o_ref[1] = s * (x01 - x23)
    o_ref[2] = s * (x02 + x13)
    o_ref[3] = s * (x01 + x23)
    o_ref[4] = 1.0 - s * (x00 + x22)
    o_ref[5] = s * (x12 - x03)
    o_ref[6] = s * (x02 - x13)
    o_ref[7] = s * (x03 + x12)
    o_ref[8] = 1.0 - s * (x00 + x11)


def _pick_block_rows(n_rows):
    """Block rows: large for DMA amortization, but >=2 grid steps when possible
    (so v7x's two TensorCores both get work), and a multiple of 8 sublanes."""
    if n_rows <= 8:
        return n_rows
    half = ((n_rows + 1) // 2 + 7) // 8 * 8
    return min(BLOCK_ROWS, half)


@jax.jit
def quaternion(rvec):
    """rvec: (N, 4) float -> (N, 3, 3) rotation matrices (input dtype preserved)."""
    orig_dtype = rvec.dtype
    rvec = rvec.astype(jnp.float32)
    n = rvec.shape[0]
    n_pad = ((n + LANE - 1) // LANE) * LANE
    n_rows = n_pad // LANE

    # TODO(synk): the (N,4)->(4,N) input transpose and the final (9,N)->(N,9)
    # output transpose still run in XLA (~2x extra HBM traffic end-to-end).
    # Emitting the row-major (N,3,3) layout straight from the kernel needs a
    # lane-level 9-way interleave (an 8x16 in-vreg shuffle after padding each
    # quaternion to 16 slots); no Mosaic op sequence that reliably lowers was
    # found, and a 9-wide output block would degrade to lane-sparse vst.msk
    # stores, so the layout ops deliberately stay in XLA.  A consumer that can
    # accept the SoA (9, N) slab should call the pallas_call directly and skip
    # both transposes.
    x_t = jnp.transpose(rvec)                                   # (4, N)
    if n_pad != n:
        # Pad with 1.0 so discarded lanes never divide by ~0.
        x_t = jnp.pad(x_t, ((0, 0), (0, n_pad - n)), constant_values=1.0)
    x3d = x_t.reshape(4, n_rows, LANE)                          # free reshape

    r_blk = _pick_block_rows(n_rows)
    grid = (pl.cdiv(n_rows, r_blk),)

    cost = pl.CostEstimate(
        flops=45 * n_pad,                      # ~45 VPU ops per quaternion
        transcendentals=0,
        bytes_accessed=(4 + 9) * 4 * n_pad,    # 52 B per quaternion
    )

    out3d = pl.pallas_call(
        _quaternion_kernel,
        out_shape=jax.ShapeDtypeStruct((9, n_rows, LANE), jnp.float32),
        grid_spec=pltpu.PrefetchScalarGridSpec(
            num_scalar_prefetch=0,
            grid=grid,
            in_specs=[pl.BlockSpec((4, r_blk, LANE), lambda i: (0, i, 0))],
            out_specs=pl.BlockSpec((9, r_blk, LANE), lambda i: (0, i, 0)),
        ),
        compiler_params=pltpu.CompilerParams(
            dimension_semantics=("parallel",)),
        cost_estimate=cost,
    )(x3d)                                                      # (9, n_rows, 128)

    out = jnp.transpose(out3d.reshape(9, n_pad))                # (n_pad, 9)
    return out[:n].reshape(-1, 3, 3).astype(orig_dtype)


def _quaternion_ref(rvec):
    """Pure-JAX reference mirroring the PyTorch module."""
    theta = jnp.sqrt(1e-5 + jnp.sum(rvec ** 2, axis=1))
    r = rvec / theta[:, None]
    r0, r1, r2, r3 = r[:, 0], r[:, 1], r[:, 2], r[:, 3]
    out = jnp.stack(
        (
            1.0 - 2.0 * r1 ** 2 - 2.0 * r2 ** 2,
            2.0 * (r0 * r1 - r2 * r3),
            2.0 * (r0 * r2 + r1 * r3),
            2.0 * (r0 * r1 + r2 * r3),
            1.0 - 2.0 * r0 ** 2 - 2.0 * r2 ** 2,
            2.0 * (r1 * r2 - r0 * r3),
            2.0 * (r0 * r2 - r1 * r3),
            2.0 * (r0 * r3 + r1 * r2),
            1.0 - 2.0 * r0 ** 2 - 2.0 * r1 ** 2,
        ),
        axis=1,
    )
    return out.reshape(-1, 3, 3)


if __name__ == "__main__":
    key = jax.random.PRNGKey(0)

    # Primary small case (N=8) plus a non-128-aligned case to exercise the
    # padding / remainder path.
    for n in (8, 200):
        rvec = jax.random.normal(jax.random.fold_in(key, n), (n, 4),
                                 dtype=jnp.float32)
        out = jax.block_until_ready(quaternion(rvec))
        ref = _quaternion_ref(rvec)
        assert out.shape == (n, 3, 3), out.shape
        err = float(jnp.max(jnp.abs(out - ref)))
        assert err < 1e-5, err

    print("KERNEL_OK")
</pallas_src>

<mosaic_0001>
module attributes {stable_mosaic.version = 11 : i64} {
  func.func @_quaternion_kernel(%arg0: i32, %arg1: memref<4x1x128xf32, #tpu.memory_space<vmem>>, %arg2: memref<9x1x128xf32, #tpu.memory_space<vmem>>) attributes {dimension_semantics = [#tpu.dimension_semantics<parallel>], iteration_bounds = array<i64: 1>, scalar_prefetch = 0 : i64, scratch_operands = 0 : i64, tpu.core_type = #tpu.core_type<tc>, window_params = [{transform_indices = @transform_0, window_bounds = array<i64: 4, 1, 128>}, {transform_indices = @transform_1, window_bounds = array<i64: 9, 1, 128>}]} {
    %c0 = arith.constant 0 : index
    %c0_0 = arith.constant 0 : index
    %c0_1 = arith.constant 0 : index
    %0 = vector.load %arg1[%c0, %c0_0, %c0_1] : memref<4x1x128xf32, #tpu.memory_space<vmem>>, vector<1x1x128xf32>
    %1 = vector.shape_cast %0 : vector<1x1x128xf32> to vector<1x128xf32>
    %c1 = arith.constant 1 : index
    %c0_2 = arith.constant 0 : index
    %c0_3 = arith.constant 0 : index
    %2 = vector.load %arg1[%c1, %c0_2, %c0_3] : memref<4x1x128xf32, #tpu.memory_space<vmem>>, vector<1x1x128xf32>
    %3 = vector.shape_cast %2 : vector<1x1x128xf32> to vector<1x128xf32>
    %c2 = arith.constant 2 : index
    %c0_4 = arith.constant 0 : index
    %c0_5 = arith.constant 0 : index
    %4 = vector.load %arg1[%c2, %c0_4, %c0_5] : memref<4x1x128xf32, #tpu.memory_space<vmem>>, vector<1x1x128xf32>
    %5 = vector.shape_cast %4 : vector<1x1x128xf32> to vector<1x128xf32>
    %c3 = arith.constant 3 : index
    %c0_6 = arith.constant 0 : index
    %c0_7 = arith.constant 0 : index
    %6 = vector.load %arg1[%c3, %c0_6, %c0_7] : memref<4x1x128xf32, #tpu.memory_space<vmem>>, vector<1x1x128xf32>
    %7 = vector.shape_cast %6 : vector<1x1x128xf32> to vector<1x128xf32>
    %8 = arith.mulf %1, %1 : vector<1x128xf32>
    %9 = arith.mulf %3, %3 : vector<1x128xf32>
    %10 = arith.mulf %5, %5 : vector<1x128xf32>
    %11 = arith.mulf %7, %7 : vector<1x128xf32>
    %12 = arith.addf %8, %9 : vector<1x128xf32>
    %13 = arith.addf %10, %11 : vector<1x128xf32>
    %14 = arith.addf %12, %13 : vector<1x128xf32>
    %cst = arith.constant 9.99999974E-6 : f32
    %15 = vector.broadcast %cst : f32 to vector<1x128xf32>
    %16 = arith.addf %15, %14 : vector<1x128xf32>
    %17 = tpu.reciprocal %16 : vector<1x128xf32> -> vector<1x128xf32>
    %cst_8 = arith.constant 2.000000e+00 : f32
    %18 = vector.broadcast %cst_8 : f32 to vector<1x128xf32>
    %19 = arith.mulf %18, %17 : vector<1x128xf32>
    %20 = arith.mulf %1, %3 : vector<1x128xf32>
    %21 = arith.mulf %5, %7 : vector<1x128xf32>
    %22 = arith.mulf %1, %5 : vector<1x128xf32>
    %23 = arith.mulf %3, %7 : vector<1x128xf32>
    %24 = arith.mulf %3, %5 : vector<1x128xf32>
    %25 = arith.mulf %1, %7 : vector<1x128xf32>
    %26 = arith.addf %9, %10 : vector<1x128xf32>
    %27 = arith.mulf %19, %26 : vector<1x128xf32>
    %cst_9 = arith.constant 1.000000e+00 : f32
    %28 = vector.broadcast %cst_9 : f32 to vector<1x128xf32>
    %29 = arith.subf %28, %27 : vector<1x128xf32>
    %c0_10 = arith.constant 0 : index
    %c0_11 = arith.constant 0 : index
    %c0_12 = arith.constant 0 : index
    %30 = vector.load %arg2[%c0_10, %c0_11, %c0_12] : memref<9x1x128xf32, #tpu.memory_space<vmem>>, vector<1x1x128xf32>
    %31 = vector.shape_cast %30 : vector<1x1x128xf32> to vector<1x128xf32>
    %32 = vector.shape_cast %29 : vector<1x128xf32> to vector<1x1x128xf32>
    tpu.vector_store %arg2[%c0_10, %c0_11, %c0_12], %32 {strides = array<i32>} : memref<9x1x128xf32, #tpu.memory_space<vmem>>, vector<1x1x128xf32>,
    %33 = arith.subf %20, %21 : vector<1x128xf32>
    %34 = arith.mulf %19, %33 : vector<1x128xf32>
    %c1_13 = arith.constant 1 : index
    %c0_14 = arith.constant 0 : index
    %c0_15 = arith.constant 0 : index
    %35 = vector.load %arg2[%c1_13, %c0_14, %c0_15] : memref<9x1x128xf32, #tpu.memory_space<vmem>>, vector<1x1x128xf32>
    %36 = vector.shape_cast %35 : vector<1x1x128xf32> to vector<1x128xf32>
    %37 = vector.shape_cast %34 : vector<1x128xf32> to vector<1x1x128xf32>
    tpu.vector_store %arg2[%c1_13, %c0_14, %c0_15], %37 {strides = array<i32>} : memref<9x1x128xf32, #tpu.memory_space<vmem>>, vector<1x1x128xf32>,
    %38 = arith.addf %22, %23 : vector<1x128xf32>
    %39 = arith.mulf %19, %38 : vector<1x128xf32>
    %c2_16 = arith.constant 2 : index
    %c0_17 = arith.constant 0 : index
    %c0_18 = arith.constant 0 : index
    %40 = vector.load %arg2[%c2_16, %c0_17, %c0_18] : memref<9x1x128xf32, #tpu.memory_space<vmem>>, vector<1x1x128xf32>
    %41 = vector.shape_cast %40 : vector<1x1x128xf32> to vector<1x128xf32>
    %42 = vector.shape_cast %39 : vector<1x128xf32> to vector<1x1x128xf32>
    tpu.vector_store %arg2[%c2_16, %c0_17, %c0_18], %42 {strides = array<i32>} : memref<9x1x128xf32, #tpu.memory_space<vmem>>, vector<1x1x128xf32>,
    %43 = arith.addf %20, %21 : vector<1x128xf32>
    %44 = arith.mulf %19, %43 : vector<1x128xf32>
    %c3_19 = arith.constant 3 : index
    %c0_20 = arith.constant 0 : index
    %c0_21 = arith.constant 0 : index
    %45 = vector.load %arg2[%c3_19, %c0_20, %c0_21] : memref<9x1x128xf32, #tpu.memory_space<vmem>>, vector<1x1x128xf32>
    %46 = vector.shape_cast %45 : vector<1x1x128xf32> to vector<1x128xf32>
    %47 = vector.shape_cast %44 : vector<1x128xf32> to vector<1x1x128xf32>
    tpu.vector_store %arg2[%c3_19, %c0_20, %c0_21], %47 {strides = array<i32>} : memref<9x1x128xf32, #tpu.memory_space<vmem>>, vector<1x1x128xf32>,
    %48 = arith.addf %8, %10 : vector<1x128xf32>
    %49 = arith.mulf %19, %48 : vector<1x128xf32>
    %cst_22 = arith.constant 1.000000e+00 : f32
    %50 = vector.broadcast %cst_22 : f32 to vector<1x128xf32>
    %51 = arith.subf %50, %49 : vector<1x128xf32>
    %c4 = arith.constant 4 : index
    %c0_23 = arith.constant 0 : index
    %c0_24 = arith.constant 0 : index
    %52 = vector.load %arg2[%c4, %c0_23, %c0_24] : memref<9x1x128xf32, #tpu.memory_space<vmem>>, vector<1x1x128xf32>
    %53 = vector.shape_cast %52 : vector<1x1x128xf32> to vector<1x128xf32>
    %54 = vector.shape_cast %51 : vector<1x128xf32> to vector<1x1x128xf32>
    tpu.vector_store %arg2[%c4, %c0_23, %c0_24], %54 {strides = array<i32>} : memref<9x1x128xf32, #tpu.memory_space<vmem>>, vector<1x1x128xf32>,
    %55 = arith.subf %24, %25 : vector<1x128xf32>
    %56 = arith.mulf %19, %55 : vector<1x128xf32>
    %c5 = arith.constant 5 : index
    %c0_25 = arith.constant 0 : index
    %c0_26 = arith.constant 0 : index
    %57 = vector.load %arg2[%c5, %c0_25, %c0_26] : memref<9x1x128xf32, #tpu.memory_space<vmem>>, vector<1x1x128xf32>
    %58 = vector.shape_cast %57 : vector<1x1x128xf32> to vector<1x128xf32>
    %59 = vector.shape_cast %56 : vector<1x128xf32> to vector<1x1x128xf32>
    tpu.vector_store %arg2[%c5, %c0_25, %c0_26], %59 {strides = array<i32>} : memref<9x1x128xf32, #tpu.memory_space<vmem>>, vector<1x1x128xf32>,
    %60 = arith.subf %22, %23 : vector<1x128xf32>
    %61 = arith.mulf %19, %60 : vector<1x128xf32>
    %c6 = arith.constant 6 : index
    %c0_27 = arith.constant 0 : index
    %c0_28 = arith.constant 0 : index
    %62 = vector.load %arg2[%c6, %c0_27, %c0_28] : memref<9x1x128xf32, #tpu.memory_space<vmem>>, vector<1x1x128xf32>
    %63 = vector.shape_cast %62 : vector<1x1x128xf32> to vector<1x128xf32>
    %64 = vector.shape_cast %61 : vector<1x128xf32> to vector<1x1x128xf32>
    tpu.vector_store %arg2[%c6, %c0_27, %c0_28], %64 {strides = array<i32>} : memref<9x1x128xf32, #tpu.memory_space<vmem>>, vector<1x1x128xf32>,
    %65 = arith.addf %25, %24 : vector<1x128xf32>
    %66 = arith.mulf %19, %65 : vector<1x128xf32>
    %c7 = arith.constant 7 : index
    %c0_29 = arith.constant 0 : index
    %c0_30 = arith.constant 0 : index
    %67 = vector.load %arg2[%c7, %c0_29, %c0_30] : memref<9x1x128xf32, #tpu.memory_space<vmem>>, vector<1x1x128xf32>
    %68 = vector.shape_cast %67 : vector<1x1x128xf32> to vector<1x128xf32>
    %69 = vector.shape_cast %66 : vector<1x128xf32> to vector<1x1x128xf32>
    tpu.vector_store %arg2[%c7, %c0_29, %c0_30], %69 {strides = array<i32>} : memref<9x1x128xf32, #tpu.memory_space<vmem>>, vector<1x1x128xf32>,
    %70 = arith.addf %8, %9 : vector<1x128xf32>
    %71 = arith.mulf %19, %70 : vector<1x128xf32>
    %cst_31 = arith.constant 1.000000e+00 : f32
    %72 = vector.broadcast %cst_31 : f32 to vector<1x128xf32>
    %73 = arith.subf %72, %71 : vector<1x128xf32>
    %c8 = arith.constant 8 : index
    %c0_32 = arith.constant 0 : index
    %c0_33 = arith.constant 0 : index
    %74 = vector.load %arg2[%c8, %c0_32, %c0_33] : memref<9x1x128xf32, #tpu.memory_space<vmem>>, vector<1x1x128xf32>
    %75 = vector.shape_cast %74 : vector<1x1x128xf32> to vector<1x128xf32>
    %76 = vector.shape_cast %73 : vector<1x128xf32> to vector<1x1x128xf32>
    tpu.vector_store %arg2[%c8, %c0_32, %c0_33], %76 {strides = array<i32>} : memref<9x1x128xf32, #tpu.memory_space<vmem>>, vector<1x1x128xf32>,
    return
  }
  func.func @transform_0(%arg0: i32) -> (i32, i32, i32) {
    %c0_i32 = arith.constant 0 : i32
    %c0_i32_0 = arith.constant 0 : i32
    %c0_i32_1 = arith.constant 0 : i32
    return %c0_i32, %arg0, %c0_i32_0 : i32, i32, i32
  }
  func.func @transform_1(%arg0: i32) -> (i32, i32, i32) {
    %c0_i32 = arith.constant 0 : i32
    %c0_i32_0 = arith.constant 0 : i32
    %c0_i32_1 = arith.constant 0 : i32
    return %c0_i32, %arg0, %c0_i32_0 : i32, i32, i32
  }
}

</mosaic_0001>

<bundles_post_ra>
// kernel: quaternion.1
= control target key start
LH: loop header
LB: loop body
LE: loop exit
PB: predicated region body
PF: predicated region fallthrough
CT: control target
= control target key end

     0   :  { %s134_s0 = inlined_call_operand.vmem [shape: f32[4,1,128], index: 0, kind: input, shape index: {}]   ;;  %s135_s1 = inlined_call_operand.vmem [shape: f32[9,1,128], index: 1, kind: output, shape index: {}]  }
   0x1   :  { %v8_v0 = vld [vmem:[%s134_s0] sm:$0x1]  ;;  %v72_v1 = vld [vmem:[%s134_s0 + $0x1] sm:$0x1]  ;;  %v73_v2 = vld [vmem:[%s134_s0 + $0x2] sm:$0x1] }
   0x2   :  { %v74_v3 = vld [vmem:[%s134_s0 + $0x3] sm:$0x1]  ;;  %v15_v4 = vmul.f32 %v8_v0, %v8_v0  ;;  %v16_v5 = vmul.f32 %v72_v1, %v72_v1  ;;  %v17_v6 = vmul.f32 %v73_v2, %v73_v2  ;;  %v25_v12 = vmul.f32 %v72_v1, %v8_v0 }
   0x3   :  { %v18_v7 = vmul.f32 %v74_v3, %v74_v3  ;;  %v26_v13 = vmul.f32 %v74_v3, %v73_v2  ;;  %v27_v14 = vmul.f32 %v73_v2, %v8_v0  ;;  %v28_v15 = vmul.f32 %v74_v3, %v72_v1 }
   0x4   :  { %v19_v8 = vadd.f32 %v16_v5, %v15_v4  ;;  %v29_v16 = vmul.f32 %v73_v2, %v72_v1  ;;  %v30_v17 = vmul.f32 %v74_v3, %v8_v0  ;;  %v31_v18 = vadd.f32 %v17_v6, %v16_v5 }
   0x5   :  { %v20_v9 = vadd.f32 %v18_v7, %v17_v6  ;;  %v35_v19 = vsub.f32 %v25_v12, %v26_v13  ;;  %v39_v20 = vadd.f32 %v28_v15, %v27_v14  ;;  %v43_v21 = vadd.f32 %v26_v13, %v25_v12 }
   0x6   :  { %v47_v23 = vadd.f32 %v17_v6, %v15_v4  ;;  %v52_v24 = vsub.f32 %v29_v16, %v30_v17  ;;  %v56_v25 = vsub.f32 %v27_v14, %v28_v15  ;;  %v60_v26 = vadd.f32 %v30_v17, %v29_v16 }
   0x7   :  { %v21_v10 = vadd.f32 %v20_v9, %v19_v8 }
   0x9   :  { %v22_v11 = vadd.f32 1e-05, %v21_v10 }
   0xb   :  { %83 = vrcp.f32 %v22_v11 }
  0x15   :  { %v84_v22 = vpop.eup %83 }
  0x16   :  { %v24_v27 = vmul.f32 2.0, %v84_v22 }
  0x18   :  { %v32_v28 = vmul.f32 %v31_v18, %v24_v27  ;;  %v36_v29 = vmul.f32 %v35_v19, %v24_v27  ;;  %v40_v30 = vmul.f32 %v39_v20, %v24_v27  ;;  %v44_v31 = vmul.f32 %v43_v21, %v24_v27 }
  0x19   :  { %v48_v32 = vmul.f32 %v47_v23, %v24_v27  ;;  %v53_v33 = vmul.f32 %v52_v24, %v24_v27  ;;  %v57_v34 = vmul.f32 %v56_v25, %v24_v27  ;;  %v61_v35 = vmul.f32 %v60_v26, %v24_v27 }
  0x1a   :  { %v33_v36 = vsub.f32 1.0, %v32_v28  ;;  %75 = vst [vmem:[%s135_s1 + $0x1] sm:$0x1] %v36_v29  ;;  %76 = vst [vmem:[%s135_s1 + $0x2] sm:$0x1] %v40_v30  ;;  %v64_v37 = vmul.f32 %v24_v27, %v19_v8 }
  0x1b   :  { %77 = vst [vmem:[%s135_s1 + $0x3] sm:$0x1] %v44_v31  ;;  %v49_v38 = vsub.f32 1.0, %v48_v32  ;;  %79 = vst [vmem:[%s135_s1 + $0x5] sm:$0x1] %v53_v33 }
  0x1c   :  { %80 = vst [vmem:[%s135_s1 + $0x6] sm:$0x1] %v57_v34  ;;  %81 = vst [vmem:[%s135_s1 + $0x7] sm:$0x1] %v61_v35  ;;  %v65_v39 = vsub.f32 1.0, %v64_v37 }
  0x1d   :  { %34 = vst [vmem:[%s135_s1] sm:$0x1] %v33_v36  ;;  %78 = vst [vmem:[%s135_s1 + $0x4] sm:$0x1] %v49_v38 }
  0x1e   :  { %82 = vst [vmem:[%s135_s1 + $0x8] sm:$0x1] %v65_v39 }

</bundles_post_ra>
